<compile_context>
chip_gen: v7x
topology: tpu7x:2x2x1
jax: 0.10.0
libtpu: 0.0.40
codegen_flags: <defaults>
</compile_context>

<pallas_src>
import functools

import jax
import jax.numpy as jnp
import numpy as np
from jax.experimental import pallas as pl
from jax.experimental.pallas import tpu as pltpu

_LANES = 128
_MAX_TILE_ROWS = 2048   # (2048, 128) f32 tile = 1 MiB per pipeline buffer
_N_SPLIT = 2            # leading "parallel" axis; shards rows across TCs on v7x


def _corner_mask():
    r = jax.lax.broadcasted_iota(jnp.int32, (8, _LANES), 0)
    c = jax.lax.broadcasted_iota(jnp.int32, (8, _LANES), 1)
    return (r == 0) & (c == 0)


def _loss_vae_kernel(xr_ref, x_ref, mu_ref, lv_ref, mse_ref, kld_ref, acc_ref,
                     *, tiles_per_split, tile_rows, n_valid_rows):
    s = pl.program_id(0)   # split index (TensorCore shard on v7x)
    i = pl.program_id(1)   # tile index within this split

    @pl.when(i == 0)
    def _():
        acc_ref[...] = jnp.zeros_like(acc_ref)
        # KLD term: tiny ([N, Z]); compute once per split, hidden under the MSE
        # DMA stream. Only split 0 owns the value (others write 0) so the
        # wrapper can simply sum the partial slabs. Zero padding contributes
        # 1 + 0 - 0 - exp(0) == 0, so no masking is needed here.
        mu = mu_ref[...]
        lv = lv_ref[...]
        if mu.dtype != jnp.float32:
            mu = mu.astype(jnp.float32)
            lv = lv.astype(jnp.float32)
        kld = jnp.sum(1.0 + lv - mu * mu - jnp.exp(lv))
        kld_val = jnp.where(s == 0, kld, 0.0)
        kld_ref[...] = jnp.where(_corner_mask(), kld_val, 0.0)

    # MSE partial: accumulate (x_recon - x)^2 into a vreg-shaped VMEM slab.
    xr = xr_ref[...]
    x = x_ref[...]
    if xr.dtype != jnp.float32:
        xr = xr.astype(jnp.float32)
        x = x.astype(jnp.float32)
    d = xr - x
    sq = d * d
    # Mask rows past the real data: the (possibly partial) last tile and any
    # duplicated (clamped) tiles introduced by the uneven 2-way split.
    g = s * tiles_per_split + i                       # unclamped global tile idx
    rows = g * tile_rows + jax.lax.broadcasted_iota(jnp.int32, sq.shape, 0)
    acc_ref[...] += jnp.where(rows < n_valid_rows, sq, 0.0)

    @pl.when(i == pl.num_programs(1) - 1)
    def _():
        # Single cross-lane tree reduce per split; final scaling is in the wrapper.
        total = jnp.sum(acc_ref[...])
        mse_ref[...] = jnp.where(_corner_mask(), total, 0.0)


def _flatten_lane_pad(a):
    """Flatten to 1D, zero-pad (only if needed) to a multiple of 128 lanes and
    reshape to a lane-dense [rows, 128] layout. Zero padding is loss-neutral
    for both terms."""
    flat = a.reshape(-1)
    pad = (-flat.shape[0]) % _LANES
    if pad:
        flat = jnp.pad(flat, (0, pad))
    return flat.reshape(-1, _LANES)


def loss_vae(x_recon, x, mu, logvar, KLD_weight=0.5):
    """Returns (loss_MSE, loss_KLD) matching Loss_VAE.forward.

    Note: KLD_weight is stored but unused in the PyTorch forward; kept for parity.
    """
    del KLD_weight  # unused in the reference forward

    n_elems = int(np.prod(x_recon.shape))
    xr2d = _flatten_lane_pad(x_recon)
    x2d = _flatten_lane_pad(x)
    mu2d = _flatten_lane_pad(mu)
    lv2d = _flatten_lane_pad(logvar)

    n_rows = xr2d.shape[0]
    # Single full-extent tile for small inputs; otherwise 2048-row tiles.
    tile_rows = n_rows if n_rows <= _MAX_TILE_ROWS else _MAX_TILE_ROWS
    n_tiles = pl.cdiv(n_rows, tile_rows)
    n_split = min(_N_SPLIT, n_tiles)
    tiles_per_split = pl.cdiv(n_tiles, n_split)

    if n_tiles % n_split == 0:
        def tile_idx(s, i):
            return s * tiles_per_split + i
    else:
        # Uneven split: clamp so no block is fully out of bounds; the in-kernel
        # row mask zeroes the duplicated tile's contribution.
        def tile_idx(s, i):
            return jnp.minimum(s * tiles_per_split + i, n_tiles - 1)

    img_spec = pl.BlockSpec((tile_rows, _LANES), lambda s, i: (tile_idx(s, i), 0))
    # NOTE: on v7x (faster HBM) pipeline_mode=pl.Buffered(3) on the two image
    # specs would keep the DMA engine saturated; default double buffering keeps
    # total VMEM ~6 MiB, well under v5e's 16 MiB scoped default.

    kernel = functools.partial(
        _loss_vae_kernel,
        tiles_per_split=tiles_per_split,
        tile_rows=tile_rows,
        n_valid_rows=n_rows,
    )

    mse_parts, kld_parts = pl.pallas_call(
        kernel,
        out_shape=(
            jax.ShapeDtypeStruct((n_split * 8, _LANES), jnp.float32),
            jax.ShapeDtypeStruct((n_split * 8, _LANES), jnp.float32),
        ),
        grid_spec=pltpu.PrefetchScalarGridSpec(
            num_scalar_prefetch=0,
            grid=(n_split, tiles_per_split),
            in_specs=[
                img_spec,
                img_spec,
                pl.BlockSpec(mu2d.shape, lambda s, i: (0, 0)),   # tiny, resident
                pl.BlockSpec(lv2d.shape, lambda s, i: (0, 0)),   # tiny, resident
            ],
            out_specs=[
                pl.BlockSpec((8, _LANES), lambda s, i: (s, 0)),
                pl.BlockSpec((8, _LANES), lambda s, i: (s, 0)),
            ],
            scratch_shapes=[pltpu.VMEM((tile_rows, _LANES), jnp.float32)],
        ),
        compiler_params=pltpu.CompilerParams(
            dimension_semantics=("parallel", "arbitrary"),
        ),
    )(xr2d, x2d, mu2d, lv2d)

    # Only one element per split slab is nonzero, so plain sums combine partials.
    loss_mse = (0.5 / n_elems) * jnp.sum(mse_parts)
    loss_kld = -0.5 * jnp.sum(kld_parts)
    return loss_mse, loss_kld


if __name__ == "__main__":
    key = jax.random.PRNGKey(0)
    k1, k2, k3, k4 = jax.random.split(key, 4)

    # Shapes implied by a small VAE: image batch NCHW + latent [N, Z]
    x_recon = jax.random.normal(k1, (2, 4, 16, 16), dtype=jnp.float32)
    x = jax.random.normal(k2, (2, 4, 16, 16), dtype=jnp.float32)
    mu = jax.random.normal(k3, (2, 32), dtype=jnp.float32)
    logvar = 0.1 * jax.random.normal(k4, (2, 32), dtype=jnp.float32)

    loss_mse, loss_kld = loss_vae(x_recon, x, mu, logvar)
    jax.block_until_ready((loss_mse, loss_kld))

    # Pure-JAX reference check
    ref_mse = 0.5 * jnp.mean((x_recon - x) ** 2)
    ref_kld = -0.5 * jnp.sum(1.0 + logvar - mu**2 - jnp.exp(logvar))
    assert np.allclose(np.asarray(loss_mse), np.asarray(ref_mse), rtol=1e-5, atol=1e-5)
    assert np.allclose(np.asarray(loss_kld), np.asarray(ref_kld), rtol=1e-5, atol=1e-5)

    print("KERNEL_OK")
</pallas_src>

<mosaic_0001>
module attributes {stable_mosaic.version = 11 : i64} {
  func.func @_loss_vae_kernel(%arg0: i32, %arg1: i32, %arg2: memref<16x128xf32, #tpu.memory_space<vmem>>, %arg3: memref<16x128xf32, #tpu.memory_space<vmem>>, %arg4: memref<1x128xf32, #tpu.memory_space<vmem>>, %arg5: memref<1x128xf32, #tpu.memory_space<vmem>>, %arg6: memref<8x128xf32, #tpu.memory_space<vmem>>, %arg7: memref<8x128xf32, #tpu.memory_space<vmem>>, %arg8: memref<16x128xf32, #tpu.memory_space<vmem>>) attributes {dimension_semantics = [#tpu.dimension_semantics<parallel>, #tpu.dimension_semantics<arbitrary>], iteration_bounds = array<i64: 1, 1>, scalar_prefetch = 0 : i64, scratch_operands = 1 : i64, tpu.core_type = #tpu.core_type<tc>, window_params = [{transform_indices = @transform_0, window_bounds = array<i64: 16, 128>}, {transform_indices = @transform_1, window_bounds = array<i64: 16, 128>}, {pipeline_mode = #tpu.pipeline_mode<synchronous>, transform_indices = @transform_2, window_bounds = array<i64: 1, 128>}, {pipeline_mode = #tpu.pipeline_mode<synchronous>, transform_indices = @transform_3, window_bounds = array<i64: 1, 128>}, {transform_indices = @transform_4, window_bounds = array<i64: 8, 128>}, {transform_indices = @transform_5, window_bounds = array<i64: 8, 128>}]} {
    %c0_i32 = arith.constant 0 : i32
    %0 = arith.cmpi eq, %arg1, %c0_i32 : i32
    %1 = arith.extui %0 : i1 to i32
    %c0_i32_0 = arith.constant 0 : i32
    %2 = arith.cmpi ne, %1, %c0_i32_0 : i32
    scf.if %2 {
      %cst_11 = arith.constant 0.000000e+00 : f32
      %23 = vector.broadcast %cst_11 : f32 to vector<16x128xf32>
      %c0_12 = arith.constant 0 : index
      %c0_13 = arith.constant 0 : index
      %24 = vector.load %arg8[%c0_12, %c0_13] : memref<16x128xf32, #tpu.memory_space<vmem>>, vector<16x128xf32>
      tpu.vector_store %arg8[%c0_12, %c0_13], %23 {strides = array<i32>} : memref<16x128xf32, #tpu.memory_space<vmem>>, vector<16x128xf32>,
      %c0_14 = arith.constant 0 : index
      %c0_15 = arith.constant 0 : index
      %25 = vector.load %arg4[%c0_14, %c0_15] : memref<1x128xf32, #tpu.memory_space<vmem>>, vector<1x128xf32>
      %c0_16 = arith.constant 0 : index
      %c0_17 = arith.constant 0 : index
      %26 = vector.load %arg5[%c0_16, %c0_17] : memref<1x128xf32, #tpu.memory_space<vmem>>, vector<1x128xf32>
      %cst_18 = arith.constant 1.000000e+00 : f32
      %27 = vector.broadcast %cst_18 : f32 to vector<1x128xf32>
      %28 = arith.addf %27, %26 : vector<1x128xf32>
      %29 = arith.mulf %25, %25 : vector<1x128xf32>
      %30 = arith.subf %28, %29 : vector<1x128xf32>
      %31 = math.exp %26 : vector<1x128xf32>
      %32 = arith.subf %30, %31 : vector<1x128xf32>
      %33 = vector.shape_cast %32 : vector<1x128xf32> to vector<1x1x128xf32>
      %cst_19 = arith.constant dense<0.000000e+00> : vector<1xf32>
      %34 = vector.multi_reduction <add>, %33, %cst_19 [1, 2] : vector<1x1x128xf32> to vector<1xf32>
      %35 = vector.shape_cast %34 : vector<1xf32> to vector<1x1x1xf32>
      %36 = vector.extract %35[0, 0, 0] : f32 from vector<1x1x1xf32>
      %c0_i32_20 = arith.constant 0 : i32
      %37 = arith.cmpi eq, %arg0, %c0_i32_20 : i32
      %cst_21 = arith.constant 0.000000e+00 : f32
      %38 = arith.select %37, %36, %cst_21 : f32
      %39 = tpu.iota {dimensions = array<i32: 0>} : vector<8x128xi32>
      %40 = tpu.iota {dimensions = array<i32: 1>} : vector<8x128xi32>
      %c0_i32_22 = arith.constant 0 : i32
      %41 = vector.broadcast %c0_i32_22 : i32 to vector<8x128xi32>
      %42 = arith.cmpi eq, %39, %41 : vector<8x128xi32>
      %c0_i32_23 = arith.constant 0 : i32
      %43 = vector.broadcast %c0_i32_23 : i32 to vector<8x128xi32>
      %44 = arith.cmpi eq, %40, %43 : vector<8x128xi32>
      %45 = arith.andi %42, %44 : vector<8x128xi1>
      %cst_24 = arith.constant 0.000000e+00 : f32
      %46 = vector.broadcast %38 : f32 to vector<8x128xf32>
      %47 = vector.broadcast %cst_24 : f32 to vector<8x128xf32>
      %48 = arith.select %45, %46, %47 : vector<8x128xi1>, vector<8x128xf32>
      %c0_25 = arith.constant 0 : index
      %c0_26 = arith.constant 0 : index
      %49 = vector.load %arg7[%c0_25, %c0_26] : memref<8x128xf32, #tpu.memory_space<vmem>>, vector<8x128xf32>
      tpu.vector_store %arg7[%c0_25, %c0_26], %48 {strides = array<i32>} : memref<8x128xf32, #tpu.memory_space<vmem>>, vector<8x128xf32>,
    } else {
    }
    %c0 = arith.constant 0 : index
    %c0_1 = arith.constant 0 : index
    %3 = vector.load %arg2[%c0, %c0_1] : memref<16x128xf32, #tpu.memory_space<vmem>>, vector<16x128xf32>
    %c0_2 = arith.constant 0 : index
    %c0_3 = arith.constant 0 : index
    %4 = vector.load %arg3[%c0_2, %c0_3] : memref<16x128xf32, #tpu.memory_space<vmem>>, vector<16x128xf32>
    %5 = arith.subf %3, %4 : vector<16x128xf32>
    %6 = arith.mulf %5, %5 : vector<16x128xf32>
    %c1_i32 = arith.constant 1 : i32
    %7 = arith.muli %arg0, %c1_i32 : i32
    %8 = arith.addi %7, %arg1 : i32
    %c16_i32 = arith.constant 16 : i32
    %9 = arith.muli %8, %c16_i32 : i32
    %10 = tpu.iota {dimensions = array<i32: 0>} : vector<16x128xi32>
    %11 = vector.broadcast %9 : i32 to vector<16x128xi32>
    %12 = arith.addi %11, %10 : vector<16x128xi32>
    %c0_4 = arith.constant 0 : index
    %c0_5 = arith.constant 0 : index
    %13 = vector.load %arg8[%c0_4, %c0_5] : memref<16x128xf32, #tpu.memory_space<vmem>>, vector<16x128xf32>
    %c16_i32_6 = arith.constant 16 : i32
    %14 = vector.broadcast %c16_i32_6 : i32 to vector<16x128xi32>
    %15 = arith.cmpi slt, %12, %14 : vector<16x128xi32>
    %cst = arith.constant 0.000000e+00 : f32
    %16 = vector.broadcast %cst : f32 to vector<16x128xf32>
    %17 = arith.select %15, %6, %16 : vector<16x128xi1>, vector<16x128xf32>
    %18 = arith.addf %13, %17 : vector<16x128xf32>
    %c0_7 = arith.constant 0 : index
    %c0_8 = arith.constant 0 : index
    %19 = vector.load %arg8[%c0_7, %c0_8] : memref<16x128xf32, #tpu.memory_space<vmem>>, vector<16x128xf32>
    tpu.vector_store %arg8[%c0_7, %c0_8], %18 {strides = array<i32>} : memref<16x128xf32, #tpu.memory_space<vmem>>, vector<16x128xf32>,
    %c0_i32_9 = arith.constant 0 : i32
    %20 = arith.cmpi eq, %arg1, %c0_i32_9 : i32
    %21 = arith.extui %20 : i1 to i32
    %c0_i32_10 = arith.constant 0 : i32
    %22 = arith.cmpi ne, %21, %c0_i32_10 : i32
    scf.if %22 {
      %c0_11 = arith.constant 0 : index
      %c0_12 = arith.constant 0 : index
      %23 = vector.load %arg8[%c0_11, %c0_12] : memref<16x128xf32, #tpu.memory_space<vmem>>, vector<16x128xf32>
      %24 = vector.shape_cast %23 : vector<16x128xf32> to vector<1x16x128xf32>
      %cst_13 = arith.constant dense<0.000000e+00> : vector<1xf32>
      %25 = vector.multi_reduction <add>, %24, %cst_13 [1, 2] : vector<1x16x128xf32> to vector<1xf32>
      %26 = vector.shape_cast %25 : vector<1xf32> to vector<1x1x1xf32>
      %27 = vector.extract %26[0, 0, 0] : f32 from vector<1x1x1xf32>
      %28 = tpu.iota {dimensions = array<i32: 0>} : vector<8x128xi32>
      %29 = tpu.iota {dimensions = array<i32: 1>} : vector<8x128xi32>
      %c0_i32_14 = arith.constant 0 : i32
      %30 = vector.broadcast %c0_i32_14 : i32 to vector<8x128xi32>
      %31 = arith.cmpi eq, %28, %30 : vector<8x128xi32>
      %c0_i32_15 = arith.constant 0 : i32
      %32 = vector.broadcast %c0_i32_15 : i32 to vector<8x128xi32>
      %33 = arith.cmpi eq, %29, %32 : vector<8x128xi32>
      %34 = arith.andi %31, %33 : vector<8x128xi1>
      %cst_16 = arith.constant 0.000000e+00 : f32
      %35 = vector.broadcast %27 : f32 to vector<8x128xf32>
      %36 = vector.broadcast %cst_16 : f32 to vector<8x128xf32>
      %37 = arith.select %34, %35, %36 : vector<8x128xi1>, vector<8x128xf32>
      %c0_17 = arith.constant 0 : index
      %c0_18 = arith.constant 0 : index
      %38 = vector.load %arg6[%c0_17, %c0_18] : memref<8x128xf32, #tpu.memory_space<vmem>>, vector<8x128xf32>
      tpu.vector_store %arg6[%c0_17, %c0_18], %37 {strides = array<i32>} : memref<8x128xf32, #tpu.memory_space<vmem>>, vector<8x128xf32>,
    } else {
    }
    return
  }
  func.func @transform_0(%arg0: i32, %arg1: i32) -> (i32, i32) {
    %c1_i32 = arith.constant 1 : i32
    %0 = arith.muli %arg0, %c1_i32 : i32
    %1 = arith.addi %0, %arg1 : i32
    %c0_i32 = arith.constant 0 : i32
    %c0_i32_0 = arith.constant 0 : i32
    return %1, %c0_i32 : i32, i32
  }
  func.func @transform_1(%arg0: i32, %arg1: i32) -> (i32, i32) {
    %c1_i32 = arith.constant 1 : i32
    %0 = arith.muli %arg0, %c1_i32 : i32
    %1 = arith.addi %0, %arg1 : i32
    %c0_i32 = arith.constant 0 : i32
    %c0_i32_0 = arith.constant 0 : i32
    return %1, %c0_i32 : i32, i32
  }
  func.func @transform_2(%arg0: i32, %arg1: i32) -> (i32, i32) {
    %c0_i32 = arith.constant 0 : i32
    %c0_i32_0 = arith.constant 0 : i32
    %c0_i32_1 = arith.constant 0 : i32
    return %c0_i32, %c0_i32_0 : i32, i32
  }
  func.func @transform_3(%arg0: i32, %arg1: i32) -> (i32, i32) {
    %c0_i32 = arith.constant 0 : i32
    %c0_i32_0 = arith.constant 0 : i32
    %c0_i32_1 = arith.constant 0 : i32
    return %c0_i32, %c0_i32_0 : i32, i32
  }
  func.func @transform_4(%arg0: i32, %arg1: i32) -> (i32, i32) {
    %c0_i32 = arith.constant 0 : i32
    %c0_i32_0 = arith.constant 0 : i32
    return %arg0, %c0_i32 : i32, i32
  }
  func.func @transform_5(%arg0: i32, %arg1: i32) -> (i32, i32) {
    %c0_i32 = arith.constant 0 : i32
    %c0_i32_0 = arith.constant 0 : i32
    return %arg0, %c0_i32 : i32, i32
  }
}

</mosaic_0001>

<bundles_post_ra>
// kernel: tpu_custom_call.1
= control target key start
LH: loop header
LB: loop body
LE: loop exit
PB: predicated region body
PF: predicated region fallthrough
CT: control target
= control target key end

     0   :  { %11 = vsyncpa [#allocation4], 0  ;;  %s390_s0 = inlined_call_operand.hbm [shape: f32[16,128], index: 0, kind: input, shape index: {}]   ;;  %s391_s1 = inlined_call_operand.hbm [shape: f32[16,128], index: 1, kind: input, shape index: {}]   ;;  %s392_s2 = inlined_call_operand.vmem [shape: f32[1,128], index: 2, kind: input, shape index: {}]   ;;  %s393_s3 = inlined_call_operand.vmem [shape: f32[1,128], index: 3, kind: input, shape index: {}]   ;;  %s394_s4 = inlined_call_operand.hbm [shape: f32[8,128], index: 4, kind: output, shape index: {0}]   ;;  %s395_s5 = inlined_call_operand.hbm [shape: f32[8,128], index: 5, kind: output, shape index: {1}]  }
   0x1   :  { %12 = vsyncpa [#allocation7], 0 }
   0x2   :  { %13 = vsyncpa [#allocation5], 0 }
   0x3   :  { %14 = vsyncpa [#allocation10], 0  ;;  %s285_s18 = smov [#allocation3]   ;;  %s189_s22 = scalar_lea.hbm %s390_s0, 256 }
   0x4   :  { %s24_s19 = sshll.u32 %s285_s18, 4  ;;  %p190_p0 = scmp.ne.s32.totalorder %s390_s0, %s189_s22  ;;  %s25_s19 = int_to_ptr.vmem [resolvable:$true] %s24_s19 }
   0x5   :  { %p193_p1 = scmp.lt.u32.totalorder %s189_s22, %s390_s0 }
   0x7   :  { %p195_p2 = pnand %p193_p1, %p190_p0 }
   0x9   :  { %198 = shalt.err (!%p195_p2)
}
   0xa   :  { %s199_s27 = scalar_lea.vmem %s25_s19, 256  ;;  %p204_p4 = scmp.lt.s32.totalorder %s25_s19, %s25_s19 }
   0xb   :  { %p200_p3 = scmp.ne.s32.totalorder %s25_s19, %s199_s27  ;;  %p205_p5 = scmp.lt.s32.totalorder %s199_s27, %s199_s27 }
   0xd   :  { %p206_p6 = por %p205_p5, %p204_p4 }
   0xf   :  { %p207_p7 = pnand %p206_p6, %p200_p3 }
  0x11   :  { %210 = shalt.err (!%p207_p7)
}
  0x12   :  { %s286_s28 = smov 128   ;;  %s287_s29 = smov 8  }
  0x13   :  { %30 = dma.hbm_to_vmem [thread:$0]  %s390_s0, 256, %s25_s19, [#allocation4], %s286_s28, %s286_s28, %s287_s29  }
  0x14   :  { %s288_s7 = smov [#allocation6]   ;;  %s211_s11 = scalar_lea.hbm %s391_s1, 256 }
  0x15   :  { %s40_s8 = sshll.u32 %s288_s7, 4  ;;  %p212_p8 = scmp.ne.s32.totalorder %s391_s1, %s211_s11  ;;  %s41_s8 = int_to_ptr.vmem [resolvable:$true] %s40_s8 }
  0x16   :  { %p215_p9 = scmp.lt.u32.totalorder %s211_s11, %s391_s1 }
  0x18   :  { %p217_p10 = pnand %p215_p9, %p212_p8 }
  0x1a   :  { %220 = shalt.err (!%p217_p10)
}
  0x1b   :  { %s221_s16 = scalar_lea.vmem %s41_s8, 256  ;;  %p226_p12 = scmp.lt.s32.totalorder %s41_s8, %s41_s8 }
  0x1c   :  { %p222_p11 = scmp.ne.s32.totalorder %s41_s8, %s221_s16  ;;  %p227_p13 = scmp.lt.s32.totalorder %s221_s16, %s221_s16 }
  0x1e   :  { %p228_p0 = por %p227_p13, %p226_p12 }
  0x20   :  { %p229_p1 = pnand %p228_p0, %p222_p11 }
  0x22   :  { %232 = shalt.err (!%p229_p1)
}
  0x23   :  { %46 = dma.hbm_to_vmem [thread:$0]  %s391_s1, 256, %s41_s8, [#allocation7], %s286_s28, %s286_s28, %s287_s29  }
  0x24   :  { %277 = dma.done.wait [#allocation4], 256  }
  0x25   :  { %278 = vsyncadd [#allocation4], 4294967040 }
  0x26   :  { %279 = dma.done.wait [#allocation7], 256  }
  0x27   :  { %280 = vsyncadd [#allocation7], 4294967040  ;;  %v68_v0 = vld [vmem:[%s393_s3] sm:$0x1]  ;;  %v99_v6 = vld [vmem:[#allocation3 + $0x8] sm:$0xff]  ;;  %vm75_vm0 = vcmask 1040384   ;;  %v88_v32 = vlaneseq }
  0x28   :  { %v72_v1 = vmul.f32 1.442695, %v68_v0  ;;  %v67_v2 = vld [vmem:[%s392_s2] sm:$0x1]  ;;  %v69_v4 = vadd.f32 1.0, %v68_v0  ;;  %v100_v7 = vld [vmem:[#allocation6] sm:$0xff] }
  0x29   :  { %v98_v3 = vld [vmem:[#allocation3] sm:$0xff]  ;;  %v70_v5 = vmul.f32 %v67_v2, %v67_v2  ;;  %v101_v8 = vld [vmem:[#allocation6 + $0x8] sm:$0xff]  ;;  %v89_v33 = vshrl.u32 %v88_v32, 7  ;;  %v91_v34 = vand.u32 127, %v88_v32  ;;  %s289_s1 = smov [#allocation9]   ;;  %s290_s22 = smov [#allocation8]  }
  0x2a   :  { %187 = vpow2.f32 %v72_v1  ;;  %v102_v9 = vsub.f32 %v98_v3, %v100_v7  ;;  %v103_v10 = vsub.f32 %v99_v6, %v101_v8  ;;  %s163_s2 = sshll.u32 %s289_s1, 4  ;;  %s153_s23 = sshll.u32 %s290_s22, 4  ;;  %s164_s2 = int_to_ptr.vmem [resolvable:$true] %s163_s2  ;;  %s357_s23 = int_to_ptr.vmem [resolvable:$true] %s153_s23 }
  0x2b   :  { %v71_v11 = vsub.f32 %v69_v4, %v70_v5  ;;  %vm92_vm1 = vcmp.eq.s32.totalorder %v89_v33, 0  ;;  %vm93_vm2 = vcmp.eq.s32.totalorder %v91_v34, 0  ;;  %s233_s25 = scalar_lea.vmem %s164_s2, 128  ;;  %p238_p3 = scmp.lt.s32.totalorder %s164_s2, %s164_s2 }
  0x2c   :  { %v104_v13 = vmul.f32 %v102_v9, %v102_v9  ;;  %v105_v14 = vmul.f32 %v103_v10, %v103_v10  ;;  %vm351_vm3 = vmand %vm92_vm1, %vm93_vm2  ;;  %p234_p2 = scmp.ne.s32.totalorder %s164_s2, %s233_s25  ;;  %p239_p4 = scmp.lt.s32.totalorder %s233_s25, %s233_s25 }
  0x2e   :  { %v129_v17 = vadd.f32 %v105_v14, %v104_v13  ;;  %p240_p5 = por %p239_p4, %p238_p3 }
  0x30   :  { %p241_p6 = pnand %p240_p5, %p234_p2 }
  0x34   :  { %v188_v12 = vpop.eup %187 }
  0x35   :  { %v74_v15 = vsub.f32 %v71_v11, %v188_v12 }
  0x37   :  { %v76_v16 = vsel %vm75_vm0, %v74_v15, 0.0 }
  0x38   :  { %77 = vadd.xlane.f32.xlu0 %v76_v16 }
  0x3c   :  { %130 = vadd.xlane.f32.xlu0 %v129_v17 }
  0xc5   :  { %v78_v18 = vpop.xlane.xlu0 %77 }
  0xc6   :  { %v79_v19 = vrot.slane %v78_v18, 4 }
  0xc8   :  { %v80_v20 = vadd.f32 %v79_v19, %v78_v18 }
  0xc9   :  { %v131_v21 = vpop.xlane.xlu0 %130 }
  0xca   :  { %v81_v22 = vrot.slane %v80_v20, 2  ;;  %v132_v23 = vrot.slane %v131_v21, 4 }
  0xcc   :  { %v133_v24 = vadd.f32 %v132_v23, %v131_v21  ;;  %v82_v25 = vadd.f32 %v81_v22, %v80_v20 }
  0xce   :  { %v134_v26 = vrot.slane %v133_v24, 2  ;;  %v83_v27 = vrot.slane %v82_v25, 1 }
  0xd0   :  { %v135_v28 = vadd.f32 %v134_v26, %v133_v24  ;;  %v84_v29 = vadd.f32 %v83_v27, %v82_v25 }
  0xd2   :  { %177 = vpush %v84_v29  ;;  %v136_v30 = vrot.slane %v135_v28, 1 }
  0xd4   :  { %v137_v31 = vadd.f32 %v136_v30, %v135_v28 }
  0xd6   :  { %179 = vpush %v137_v31 }
 0x103   :  { %s178_s3 = spop %177 }
 0x104   :  { %v95_v36 = vstv %s178_s3 }
 0x105   :  { %v96_v37 = vsel %vm351_vm3, %v95_v36, 0.0 }
 0x106   :  { %97 = vst [vmem:[#allocation9] sm:$0xff] %v96_v37 }
 0x107   :  { %s180_s24 = spop %179 }
 0x108   :  { %v144_v38 = vstv %s180_s24 }
 0x109   :  { %244 = shalt.err (!%p241_p6)
}
 0x10a   :  { %s245_s28 = scalar_lea.hbm %s395_s5, 128 }
 0x10b   :  { %p246_p7 = scmp.ne.s32.totalorder %s395_s5, %s245_s28  ;;  %p249_p8 = scmp.lt.u32.totalorder %s245_s28, %s395_s5 }
 0x10d   :  { %p251_p9 = pnand %p249_p8, %p246_p7 }
 0x10f   :  { %254 = shalt.err (!%p251_p9)
}
 0x110   :  { %166 = dma.vmem_to_hbm [thread:$0]  %s164_s2, 128, %s395_s5, [#allocation10]   ;;  %v145_v39 = vsel %vm351_vm3, %v144_v38, 0.0 }
 0x111   :  { %146 = vst [vmem:[#allocation8] sm:$0xff] %v145_v39  ;;  %s255_s10 = scalar_lea.vmem %s357_s23, 128  ;;  %p260_p11 = scmp.lt.s32.totalorder %s357_s23, %s357_s23 }
 0x112   :  { %p256_p10 = scmp.ne.s32.totalorder %s357_s23, %s255_s10  ;;  %p261_p12 = scmp.lt.s32.totalorder %s255_s10, %s255_s10 }
 0x114   :  { %p262_p13 = por %p261_p12, %p260_p11 }
 0x116   :  { %p263_p0 = pnand %p262_p13, %p256_p10 }
 0x118   :  { %266 = shalt.err (!%p263_p0)
}
 0x119   :  { %s267_s13 = scalar_lea.hbm %s394_s4, 128 }
 0x11a   :  { %p268_p1 = scmp.ne.s32.totalorder %s394_s4, %s267_s13  ;;  %p271_p2 = scmp.lt.u32.totalorder %s267_s13, %s394_s4 }
 0x11c   :  { %p273_p3 = pnand %p271_p2, %p268_p1 }
 0x11e   :  { %276 = shalt.err (!%p273_p3)
}
 0x11f   :  { %156 = dma.vmem_to_hbm [thread:$0]  %s357_s23, 128, %s394_s4, [#allocation5]  }
 0x120   :  { %281 = dma.done.wait [#allocation5], 128  }
 0x121   :  { %282 = vsyncadd [#allocation5], 4294967168 }
 0x122   :  { %283 = dma.done.wait [#allocation10], 128  }
 0x123   :  { %284 = vsyncadd [#allocation10], 4294967168 }
 0x124   :  { %173 = vsyncpa [#allocation4], 1 }
 0x125   :  { %174 = vsyncpa [#allocation7], 1 }
 0x126   :  { %175 = vsyncpa [#allocation5], 1 }
 0x127   :  { %176 = vsyncpa [#allocation10], 1 }

</bundles_post_ra>
